<compile_context>
chip_gen: v7x
topology: tpu7x:2x2x1
jax: 0.10.0
libtpu: 0.0.40
codegen_flags: <defaults>
</compile_context>

<pallas_src>
import functools

import jax
import jax.numpy as jnp
from jax.experimental import pallas as pl
from jax.experimental.pallas import tpu as pltpu

# Small, consistent configuration (n_embd=384, block_size=256 in the original;
# scaled down per task instructions).
N_EMBD = 32
NUM_HEADS = 4
HEAD_SIZE = N_EMBD // NUM_HEADS
BATCH = 2
SEQ = 8


def _split_heads(m, heads, head_size):
    """(T, H*hs) -> (H, T, hs): one relayout; heads end up on the batch dim."""
    T = m.shape[0]
    return jnp.transpose(m.reshape(T, heads, head_size), (1, 0, 2))


def mha_kernel(x_ref, wqkv_ref, wp_ref, bp_ref, o_ref, *, heads, head_size, mxu_dtype):
    # x_ref   : (T, C)    one batch element (batch dim squeezed by BlockSpec)
    # wqkv_ref: (C, 3*C)  fused [Q | K | V] weight, head-major columns, Q pre-scaled
    # wp_ref  : (C, C)    projection weight, pre-transposed (ctx @ Wp^T)
    # bp_ref  : (1, C)    projection bias
    # o_ref   : (T, C)
    T, C = x_ref.shape
    H, hs = heads, head_size

    x = x_ref[...].astype(mxu_dtype)
    w_qkv = wqkv_ref[...].astype(mxu_dtype)

    # --- fused QKV projection: one MXU matmul (scale already folded into Q cols) ---
    qkv = jnp.dot(x, w_qkv, preferred_element_type=jnp.float32)       # (T, 3C) f32
    qkv = qkv.astype(mxu_dtype)                                        # one cast for MXU reuse

    q = _split_heads(qkv[:, :C], H, hs)          # (H, T, hs)
    k = _split_heads(qkv[:, C:2 * C], H, hs)     # (H, T, hs)
    v = _split_heads(qkv[:, 2 * C:], H, hs)      # (H, T, hs)

    # --- causal additive mask, kept 2D; broadcasts over the head dim in the add ---
    row = jax.lax.broadcasted_iota(jnp.int32, (T, T), 0)
    col = jax.lax.broadcasted_iota(jnp.int32, (T, T), 1)
    neg_mask = jnp.where(col <= row, 0.0, -1e30).astype(jnp.float32)   # (T, T)

    # --- one batched contraction over all heads (no per-head lane slices) ---
    s = jnp.einsum('hqd,hkd->hqk', q, k,
                   preferred_element_type=jnp.float32)                 # (H, T, T) f32
    s = s + neg_mask[None]

    # numerically stable softmax in f32; divide on the EUP (approx reciprocal).
    # Causal mask guarantees the diagonal is unmasked, so denom >= 1 (no ~0 denom).
    m = jnp.max(s, axis=-1, keepdims=True)
    p = jnp.exp(s - m)
    denom = jnp.sum(p, axis=-1, keepdims=True)
    wei = p * pl.reciprocal(denom, approx=True)
    # TODO(synk): attention dropout (p=0.2) skipped -- eval-mode identity.

    att = jnp.einsum('hqk,hkd->hqd', wei.astype(mxu_dtype), v,
                     preferred_element_type=jnp.float32)               # (H, T, hs)

    # --- re-assemble lane-contiguous (T, H*hs) once, then a single K=C projection ---
    ctx = jnp.transpose(att, (1, 0, 2)).reshape(T, C).astype(mxu_dtype)
    out = jnp.dot(ctx, wp_ref[...].astype(mxu_dtype),
                  preferred_element_type=jnp.float32)                  # (T, C) f32
    out = out + bp_ref[...]
    # TODO(synk): projection dropout (p=0.2) skipped -- eval-mode identity.
    o_ref[...] = out.astype(o_ref.dtype)


def multi_head_attention(x, wq, wk, wv, wp_t, bp, *, mxu_dtype=jnp.bfloat16):
    """x: (B, T, C); wq/wk/wv: (H, C, hs); wp_t: (C, C) pre-transposed; bp: (1, C)."""
    B, T, C = x.shape
    H, _, hs = wq.shape

    # torch source scales scores by full embedding dim C (not head_size); fold it
    # into the Q columns of the fused weight so the kernel never multiplies by it.
    scale = C ** (-0.5)
    to_cols = lambda w: jnp.transpose(w, (1, 0, 2)).reshape(C, H * hs)  # head-major cols
    w_qkv = jnp.concatenate(
        [to_cols(wq) * scale, to_cols(wk), to_cols(wv)], axis=1)        # (C, 3C)

    kernel = functools.partial(mha_kernel, heads=H, head_size=hs, mxu_dtype=mxu_dtype)
    out = pl.pallas_call(
        kernel,
        out_shape=jax.ShapeDtypeStruct((B, T, C), x.dtype),
        grid=(B,),  # >=2 "parallel" steps -> shardable across v7x's 2 TCs; bounded VMEM/step
        in_specs=[
            pl.BlockSpec((None, T, C), lambda b: (b, 0, 0)),   # one batch element per step
            pl.BlockSpec((C, 3 * C), lambda b: (0, 0)),        # fused QKV weight (resident)
            pl.BlockSpec((C, C), lambda b: (0, 0)),            # proj weight (resident)
            pl.BlockSpec((1, C), lambda b: (0, 0)),            # proj bias (resident)
        ],
        out_specs=pl.BlockSpec((None, T, C), lambda b: (b, 0, 0)),
        compiler_params=pltpu.CompilerParams(dimension_semantics=("parallel",)),
        # TODO(synk): at real size (n_embd=384, T=256, large B) also tile query rows,
        # stream K/V flash-style with online softmax, and set vmem_limit_bytes from
        # the actual buffer sizes; at this toy size per-step blocks are a few KiB.
    )(x, w_qkv, wp_t, bp)
    return out


def reference(x, wq, wk, wv, wp_t, bp):
    """Pure-JAX reference mirroring the PyTorch forward (eval mode)."""
    B, T, C = x.shape
    H = wq.shape[0]
    causal = jnp.tril(jnp.ones((T, T), dtype=bool))
    outs = []
    for h in range(H):
        q = x @ wq[h]
        k = x @ wk[h]
        v = x @ wv[h]
        wei = (q @ jnp.swapaxes(k, -1, -2)) * (C ** -0.5)
        wei = jnp.where(causal[None], wei, -jnp.inf)
        wei = jax.nn.softmax(wei, axis=-1)
        outs.append(wei @ v)
    cat = jnp.concatenate(outs, axis=-1)
    return cat @ wp_t + bp[0]


if __name__ == "__main__":
    key = jax.random.PRNGKey(0)
    kx, kq, kk, kv, kp, kb = jax.random.split(key, 6)

    x = jax.random.normal(kx, (BATCH, SEQ, N_EMBD), dtype=jnp.float32)
    # deterministic synthetic parameters (no checkpoint loading)
    wq = 0.02 * jax.random.normal(kq, (NUM_HEADS, N_EMBD, HEAD_SIZE), dtype=jnp.float32)
    wk = 0.02 * jax.random.normal(kk, (NUM_HEADS, N_EMBD, HEAD_SIZE), dtype=jnp.float32)
    wv = 0.02 * jax.random.normal(kv, (NUM_HEADS, N_EMBD, HEAD_SIZE), dtype=jnp.float32)
    wp = 0.02 * jax.random.normal(kp, (N_EMBD, N_EMBD), dtype=jnp.float32)  # torch (out, in)
    bp = 0.02 * jax.random.normal(kb, (1, N_EMBD), dtype=jnp.float32)

    wp_t = wp.T  # pre-transpose so the kernel computes ctx @ Wp^T

    ref = reference(x, wq, wk, wv, wp_t, bp)

    # f32 MXU operands: tight check (only the EUP approx reciprocal differs from ref).
    out_f32 = jax.block_until_ready(
        multi_head_attention(x, wq, wk, wv, wp_t, bp, mxu_dtype=jnp.float32))
    assert out_f32.shape == (BATCH, SEQ, N_EMBD)
    assert jnp.allclose(out_f32, ref, atol=5e-4, rtol=5e-4), "f32 mismatch vs reference"

    # bf16 MXU operands (review recommendation for v5e/v6e/v7x MXU throughput):
    # looser tolerance only because matmul *inputs* are bf16-rounded; accumulation
    # and all softmax math stay in f32.
    out_bf16 = jax.block_until_ready(
        multi_head_attention(x, wq, wk, wv, wp_t, bp, mxu_dtype=jnp.bfloat16))
    assert out_bf16.shape == (BATCH, SEQ, N_EMBD)
    assert jnp.allclose(out_bf16, ref, atol=1e-2, rtol=1e-2), "bf16 mismatch vs reference"

    print("KERNEL_OK")
</pallas_src>

<mosaic_0001>
module attributes {stable_mosaic.version = 11 : i64} {
  func.func @mha_kernel(%arg0: i32, %arg1: memref<1x8x32xf32, #tpu.memory_space<vmem>>, %arg2: memref<32x96xf32, #tpu.memory_space<vmem>>, %arg3: memref<32x32xf32, #tpu.memory_space<vmem>>, %arg4: memref<1x32xf32, #tpu.memory_space<vmem>>, %arg5: memref<1x8x32xf32, #tpu.memory_space<vmem>>) attributes {dimension_semantics = [#tpu.dimension_semantics<parallel>], iteration_bounds = array<i64: 2>, scalar_prefetch = 0 : i64, scratch_operands = 0 : i64, tpu.core_type = #tpu.core_type<tc>, window_params = [{transform_indices = @transform_0, window_bounds = array<i64: 1, 8, 32>}, {pipeline_mode = #tpu.pipeline_mode<synchronous>, transform_indices = @transform_1, window_bounds = array<i64: 32, 96>}, {pipeline_mode = #tpu.pipeline_mode<synchronous>, transform_indices = @transform_2, window_bounds = array<i64: 32, 32>}, {pipeline_mode = #tpu.pipeline_mode<synchronous>, transform_indices = @transform_3, window_bounds = array<i64: 1, 32>}, {transform_indices = @transform_4, window_bounds = array<i64: 1, 8, 32>}]} {
    %c0 = arith.constant 0 : index
    %c0_0 = arith.constant 0 : index
    %c0_1 = arith.constant 0 : index
    %0 = vector.load %arg1[%c0, %c0_0, %c0_1] : memref<1x8x32xf32, #tpu.memory_space<vmem>>, vector<1x8x32xf32>
    %1 = vector.shape_cast %0 : vector<1x8x32xf32> to vector<8x32xf32>
    %c0_2 = arith.constant 0 : index
    %c0_3 = arith.constant 0 : index
    %2 = vector.load %arg2[%c0_2, %c0_3] : memref<32x96xf32, #tpu.memory_space<vmem>>, vector<32x96xf32>
    %cst = arith.constant dense<0.000000e+00> : vector<8x96xf32>
    %3 = tpu.matmul %1, %2, %cst {dimension_numbers = #tpu.dot_dimension_numbers<[1], [0], [0], [1], [0, 0, 1, 1], [], []>} : vector<8x32xf32>, vector<32x96xf32>, vector<8x96xf32> -> vector<8x96xf32>
    %4 = vector.extract_strided_slice %3 {offsets = [0, 0], sizes = [8, 32], strides = [1, 1]} : vector<8x96xf32> to vector<8x32xf32>
    %5 = vector.shape_cast %4 : vector<8x32xf32> to vector<8x4x8xf32>
    %6 = tpu.transpose %5, [1, 0, 2] : vector<8x4x8xf32> -> vector<4x8x8xf32>
    %7 = vector.extract_strided_slice %3 {offsets = [0, 32], sizes = [8, 32], strides = [1, 1]} : vector<8x96xf32> to vector<8x32xf32>
    %8 = vector.shape_cast %7 : vector<8x32xf32> to vector<8x4x8xf32>
    %9 = tpu.transpose %8, [1, 0, 2] : vector<8x4x8xf32> -> vector<4x8x8xf32>
    %10 = vector.extract_strided_slice %3 {offsets = [0, 64], sizes = [8, 32], strides = [1, 1]} : vector<8x96xf32> to vector<8x32xf32>
    %11 = vector.shape_cast %10 : vector<8x32xf32> to vector<8x4x8xf32>
    %12 = tpu.transpose %11, [1, 0, 2] : vector<8x4x8xf32> -> vector<4x8x8xf32>
    %13 = tpu.iota {dimensions = array<i32: 0>} : vector<8x8xi32>
    %14 = tpu.iota {dimensions = array<i32: 1>} : vector<8x8xi32>
    %15 = arith.cmpi sle, %14, %13 : vector<8x8xi32>
    %cst_4 = arith.constant 0.000000e+00 : f32
    %cst_5 = arith.constant -1.000000e+30 : f32
    %16 = vector.broadcast %cst_4 : f32 to vector<8x8xf32>
    %17 = vector.broadcast %cst_5 : f32 to vector<8x8xf32>
    %18 = arith.select %15, %16, %17 : vector<8x8xi1>, vector<8x8xf32>
    "tpu.trace_start"() <{level = 10 : i32, message = "hqd,hkd->hqk"}> : () -> ()
    %cst_6 = arith.constant dense<0.000000e+00> : vector<4x8x8xf32>
    %19 = tpu.matmul %6, %9, %cst_6 {dimension_numbers = #tpu.dot_dimension_numbers<[2], [2], [1], [1], [0, 0, 0, 1, 1, 1], [0], [0]>} : vector<4x8x8xf32>, vector<4x8x8xf32>, vector<4x8x8xf32> -> vector<4x8x8xf32>
    "tpu.trace_stop"() : () -> ()
    %20 = vector.shape_cast %18 : vector<8x8xf32> to vector<1x8x8xf32>
    %21 = vector.broadcast %20 : vector<1x8x8xf32> to vector<4x8x8xf32>
    %22 = arith.addf %19, %21 : vector<4x8x8xf32>
    %cst_7 = arith.constant dense<0xFF800000> : vector<4x8xf32>
    %23 = vector.multi_reduction <maximumf>, %22, %cst_7 [2] : vector<4x8x8xf32> to vector<4x8xf32>
    %24 = vector.shape_cast %23 : vector<4x8xf32> to vector<4x8x1xf32>
    %25 = vector.broadcast %24 : vector<4x8x1xf32> to vector<4x8x8xf32>
    %26 = arith.subf %22, %25 : vector<4x8x8xf32>
    %27 = math.exp %26 : vector<4x8x8xf32>
    %cst_8 = arith.constant dense<0.000000e+00> : vector<4x8xf32>
    %28 = vector.multi_reduction <add>, %27, %cst_8 [2] : vector<4x8x8xf32> to vector<4x8xf32>
    %29 = vector.shape_cast %28 : vector<4x8xf32> to vector<4x8x1xf32>
    %30 = tpu.reciprocal %29 {approx = true} : vector<4x8x1xf32> -> vector<4x8x1xf32>
    %31 = vector.broadcast %30 : vector<4x8x1xf32> to vector<4x8x8xf32>
    %32 = arith.mulf %27, %31 : vector<4x8x8xf32>
    "tpu.trace_start"() <{level = 10 : i32, message = "hqk,hkd->hqd"}> : () -> ()
    %cst_9 = arith.constant dense<0.000000e+00> : vector<4x8x8xf32>
    %33 = tpu.matmul %32, %12, %cst_9 {dimension_numbers = #tpu.dot_dimension_numbers<[2], [1], [1], [2], [0, 0, 0, 1, 1, 2], [0], [0]>} : vector<4x8x8xf32>, vector<4x8x8xf32>, vector<4x8x8xf32> -> vector<4x8x8xf32>
    "tpu.trace_stop"() : () -> ()
    %34 = tpu.transpose %33, [1, 0, 2] : vector<4x8x8xf32> -> vector<8x4x8xf32>
    %35 = vector.shape_cast %34 : vector<8x4x8xf32> to vector<8x32xf32>
    %c0_10 = arith.constant 0 : index
    %c0_11 = arith.constant 0 : index
    %36 = vector.load %arg3[%c0_10, %c0_11] : memref<32x32xf32, #tpu.memory_space<vmem>>, vector<32x32xf32>
    %cst_12 = arith.constant dense<0.000000e+00> : vector<8x32xf32>
    %37 = tpu.matmul %35, %36, %cst_12 {dimension_numbers = #tpu.dot_dimension_numbers<[1], [0], [0], [1], [0, 0, 1, 1], [], []>} : vector<8x32xf32>, vector<32x32xf32>, vector<8x32xf32> -> vector<8x32xf32>
    %c0_13 = arith.constant 0 : index
    %c0_14 = arith.constant 0 : index
    %38 = vector.load %arg4[%c0_13, %c0_14] : memref<1x32xf32, #tpu.memory_space<vmem>>, vector<1x32xf32>
    %39 = vector.broadcast %38 : vector<1x32xf32> to vector<8x32xf32>
    %40 = arith.addf %37, %39 : vector<8x32xf32>
    %c0_15 = arith.constant 0 : index
    %c0_16 = arith.constant 0 : index
    %c0_17 = arith.constant 0 : index
    %41 = vector.load %arg5[%c0_15, %c0_16, %c0_17] : memref<1x8x32xf32, #tpu.memory_space<vmem>>, vector<1x8x32xf32>
    %42 = vector.shape_cast %41 : vector<1x8x32xf32> to vector<8x32xf32>
    %43 = vector.shape_cast %40 : vector<8x32xf32> to vector<1x8x32xf32>
    tpu.vector_store %arg5[%c0_15, %c0_16, %c0_17], %43 {strides = array<i32>} : memref<1x8x32xf32, #tpu.memory_space<vmem>>, vector<1x8x32xf32>,
    return
  }
  func.func @transform_0(%arg0: i32) -> (i32, i32, i32) {
    %c0_i32 = arith.constant 0 : i32
    %c0_i32_0 = arith.constant 0 : i32
    %c0_i32_1 = arith.constant 0 : i32
    return %arg0, %c0_i32, %c0_i32_0 : i32, i32, i32
  }
  func.func @transform_1(%arg0: i32) -> (i32, i32) {
    %c0_i32 = arith.constant 0 : i32
    %c0_i32_0 = arith.constant 0 : i32
    %c0_i32_1 = arith.constant 0 : i32
    return %c0_i32, %c0_i32_0 : i32, i32
  }
  func.func @transform_2(%arg0: i32) -> (i32, i32) {
    %c0_i32 = arith.constant 0 : i32
    %c0_i32_0 = arith.constant 0 : i32
    %c0_i32_1 = arith.constant 0 : i32
    return %c0_i32, %c0_i32_0 : i32, i32
  }
  func.func @transform_3(%arg0: i32) -> (i32, i32) {
    %c0_i32 = arith.constant 0 : i32
    %c0_i32_0 = arith.constant 0 : i32
    %c0_i32_1 = arith.constant 0 : i32
    return %c0_i32, %c0_i32_0 : i32, i32
  }
  func.func @transform_4(%arg0: i32) -> (i32, i32, i32) {
    %c0_i32 = arith.constant 0 : i32
    %c0_i32_0 = arith.constant 0 : i32
    %c0_i32_1 = arith.constant 0 : i32
    return %arg0, %c0_i32, %c0_i32_0 : i32, i32, i32
  }
}

</mosaic_0001>

<bundles_post_ra>
// kernel: tpu_custom_call.1
= control target key start
LH: loop header
LB: loop body
LE: loop exit
PB: predicated region body
PF: predicated region fallthrough
CT: control target
= control target key end

     0   :  { %9 = vsyncpa [#allocation3], 0  ;;  %s2602_s0 = inlined_call_operand.hbm [shape: f32[2,8,32], index: 0, kind: input, shape index: {}]   ;;  %s2603_s1 = inlined_call_operand.hbm [shape: f32[32,96], index: 1, kind: input, shape index: {}]   ;;  %s2604_s2 = inlined_call_operand.hbm [shape: f32[32,32], index: 2, kind: input, shape index: {}]   ;;  %s2605_s3 = inlined_call_operand.vmem [shape: f32[1,32], index: 3, kind: input, shape index: {}]   ;;  %s2606_s4 = inlined_call_operand.hbm [shape: f32[2,8,32], index: 4, kind: output, shape index: {}]  }
   0x1   :  { %11 = vsyncpa [#allocation3 + $0x1], 0 }
   0x2   :  { %12 = vsyncpa [#allocation6], 0 }
   0x3   :  { %13 = vsyncpa [#allocation4], 0 }
   0x4   :  { %15 = vsyncpa [#allocation4 + $0x1], 0  ;;  %s2192_s15 = smov 0   ;;  %s2194_s16 = smov 0  }
   0x5   :  { %s2196_s17 = smov 0   ;;  %s2198_s18 = smov 0  }
   0x6 LB: > { %s2213_s19 = sadd.s32 4294967295, %s2145_s18   ;;  %s1751_s20 = sadd.s32 4294967294, %s2145_s18   ;;  %s2145_s18 = sphi %s2198_s18, %s2626_s18   ;;  %s2141_s17 = sphi %s2196_s17, %s2625_s17   ;;  %s2137_s16 = sphi %s2194_s16, %s2624_s16   ;;  %s2133_s15 = sphi %s2192_s15, %s2623_s15  }
   0x7   : > { %p41_p0 = scmp.ne.s32.totalorder %s2137_s16, %s2133_s15  ;;  %p2607_p1 = scmp.eq.s32.totalorder %s2213_s19, 0 }
   0x8   : > { %p134_p3 = scmp.eq.s32.totalorder %s1751_s20, 1  ;;  %p1752_p5 = scmp.ge.s32.totalorder %s2145_s18, 1 }
   0x9   : > { %p2222_p4 = por %p2607_p1, %p41_p0  ;;  %p141_p7 = scmp.lt.s32.totalorder %s2145_s18, 3 }
   0xa   : > { %p2227_p6 = por %p134_p3, %p41_p0  ;;  %s2147_s24 = smov [#allocation5]  }
   0xb   : > { %s2610_s21 = scalar_select %p2222_p4, 1, 0 }
   0xc   : > { %s2611_s22 = scalar_select %p2227_p6, 1, 0 }
   0xd   : > { %p2232_p8 = pnand %p1752_p5, %p141_p7  ;;  %s153_s25 = sshll.u32 %s2147_s24, 4  ;;  %s2236_s25 = int_to_ptr.vmem [resolvable:$true] %s153_s25 }
   0xe   : > { %s2148_s27 = smov [#allocation7]   ;;  %s1989_s5 = scalar_lea.hbm %s2603_s1, 512 }
   0xf   : > { %p1902_p9 = pneg %p2232_p8  ;;  %s166_s28 = sshll.u32 %s2148_s27, 4  ;;  %s2247_s28 = int_to_ptr.vmem [resolvable:$true] %s166_s28 }
  0x10   : > { %p1990_p12 = scmp.ne.s32.totalorder %s2603_s1, %s1989_s5  ;;  %p1996_p5 = scmp.lt.u32.totalorder %s1989_s5, %s2603_s1 }
  0x11   : > { %p2243_p11 = pnand %p1902_p9, %p2607_p1 }
  0x13   : > { %p1991_p13 = pneg %p2243_p11 }
  0x15   : > { %p1992_p0 = pnand %p1991_p13, %p1990_p12 }
  0x17   : > { %p1993_p3 = pneg %p1992_p0 }
  0x19   : > { %p1998_p7 = pnand %p1996_p5, %p1993_p3 }
  0x1b   : > { %2001 = shalt.err (!%p1998_p7)
}
  0x1c   : > { %s2002_s10 = scalar_lea.vmem %s2236_s25, 512  ;;  %p2010_p2 = scmp.lt.s32.totalorder %s2236_s25, %s2236_s25 }
  0x1d   : > { %p2003_p9 = scmp.ne.s32.totalorder %s2236_s25, %s2002_s10  ;;  %p2011_p12 = scmp.lt.s32.totalorder %s2002_s10, %s2002_s10 }
  0x1f   : > { %p2005_p10 = pnand %p2003_p9, %p1991_p13  ;;  %p2012_p0 = por %p2011_p12, %p2010_p2 }
  0x21   : > { %p2006_p1 = pneg %p2005_p10 }
  0x23   : > { %p2013_p6 = pnand %p2012_p0, %p2006_p1 }
  0x25   : > { %2016 = shalt.err (!%p2013_p6)
}
  0x26   : > { %s2149_s11 = smov 128   ;;  %s2150_s12 = smov 8  }
  0x27   : > { %1905 = dma.hbm_to_vmem [thread:$0]  (!%p2243_p11), %s2603_s1, 512, %s2236_s25, [#allocation6], %s2149_s11, %s2149_s11, %s2150_s12  }
  0x28   : > { %s2017_s27 = scalar_lea.hbm %s2604_s2, 512 }
  0x29   : > { %p2018_p2 = scmp.ne.s32.totalorder %s2604_s2, %s2017_s27  ;;  %p2024_p10 = scmp.lt.u32.totalorder %s2017_s27, %s2604_s2 }
  0x2b   : > { %p2020_p1 = pnand %p2018_p2, %p1991_p13 }
  0x2d   : > { %p2021_p6 = pneg %p2020_p1 }
  0x2f   : > { %p2026_p3 = pnand %p2024_p10, %p2021_p6 }
  0x31   : > { %2029 = shalt.err (!%p2026_p3)
}
  0x32   : > { %s2030_s25 = scalar_lea.vmem %s2247_s28, 512  ;;  %p2038_p12 = scmp.lt.s32.totalorder %s2247_s28, %s2247_s28 }
  0x33   : > { %p2031_p5 = scmp.ne.s32.totalorder %s2247_s28, %s2030_s25  ;;  %p2039_p0 = scmp.lt.s32.totalorder %s2030_s25, %s2030_s25 }
  0x35   : > { %p2033_p7 = pnand %p2031_p5, %p1991_p13  ;;  %p2040_p2 = por %p2039_p0, %p2038_p12 }
  0x37   : > { %p2034_p9 = pneg %p2033_p7 }
  0x39   : > { %p2041_p1 = pnand %p2040_p2, %p2034_p9 }
  0x3b   : > { %2044 = shalt.err (!%p2041_p1)
}
  0x3c   : > { %1908 = dma.hbm_to_vmem [thread:$0]  (!%p2243_p11), %s2604_s2, 512, %s2247_s28, [#allocation6], %s2149_s11, %s2149_s11, %s2150_s12  }
  0x3d   : > { %s2302_s9 = sadd.s32 1, %s2145_s18   ;;  %s28_s26 = sadd.s32 1, %s2141_s17 }
  0x3e   : > { %s25_s10 = ssub.s32 %s2145_s18, %s2302_s9  ;;  %p35_p13 = scmp.ne.s32.totalorder %s2141_s17, %s2137_s16 }
  0x3f   : > { %p26_p6 = scmp.eq.s32.totalorder %s25_s10, 0  ;;  %p36_p10 = scmp.eq.s32.totalorder %s2145_s18, 0 }
  0x40   : > { %p2614_p3 = scmp.eq.s32.totalorder %s2213_s19, 1  ;;  %p1919_p7 = scmp.lt.s32.totalorder %s2145_s18, 2 }
  0x41   : > { %s2318_s14 = scalar_select %p26_p6, %s2141_s17, %s28_s26  }
  0x42   : > { %p2312_p5 = por %p2614_p3, %p35_p13  ;;  %p37_p9 = por %p36_p10, %p35_p13 }
  0x43   : > { %s183_s20 = sand.u32 1, %s2141_s17   ;;  %s1757_s28 = sshll.u32 %s2145_s18, 7 }
  0x44   : > { %s2615_s13 = scalar_select %p2312_p5, 1, 0 }
  0x45   : > { %s1756_s24 = sshll.u32 %s183_s20, 3  ;;  %s2325_s27 = scalar_lea.hbm %s2602_s0, %s1757_s28 }
  0x46   : > { %s187_s29 = scalar_lea.vmem [#allocation2], %s1756_s24  ;;  %p2329_p11 = pnand %p1919_p7, %p37_p9 }
  0x47   : > { %s194_s30 = sshll.u32 %s187_s29, 4  ;;  %s184_s6 = scalar_lea.sflag [#allocation3], %s183_s20  ;;  %s2327_s30 = int_to_ptr.vmem [resolvable:$true] %s194_s30 }
  0x48   : > { %s2045_s25 = scalar_lea.hbm %s2325_s27, 128  ;;  %p2047_p0 = pneg %p2329_p11 }
  0x49   : > { %p2046_p12 = scmp.ne.s32.totalorder %s2325_s27, %s2045_s25  ;;  %s2050_s26 = scalar_lea.hbm %s2602_s0, 256 }
  0x4a   : > { %p2051_p13 = scmp.lt.u32.totalorder %s2325_s27, %s2602_s0  ;;  %p2052_p6 = scmp.lt.u32.totalorder %s2050_s26, %s2045_s25 }
  0x4b   : > { %p2048_p2 = pnand %p2047_p0, %p2046_p12  ;;  %p2054_p3 = scmp.lt.u32.totalorder %s2045_s25, %s2325_s27 }
  0x4c   : > { %p2053_p10 = por %p2052_p6, %p2051_p13 }
  0x4d   : > { %p2049_p1 = pneg %p2048_p2 }
  0x4e   : > { %p2055_p7 = por %p2054_p3, %p2053_p10 }
  0x50   : > { %p2056_p9 = pnand %p2055_p7, %p2049_p1 }
  0x52   : > { %2059 = shalt.err (!%p2056_p9)
}
  0x53   : > { %s2060_s20 = scalar_lea.vmem %s2327_s30, 128  ;;  %s2151_s28 = smov [#allocation2]  }
  0x54   : > { %p2061_p12 = scmp.ne.s32.totalorder %s2327_s30, %s2060_s20  ;;  %s2065_s11 = sshll.u32 %s2151_s28, 4  ;;  %s2066_s11 = int_to_ptr.vmem [resolvable:$false] %s2065_s11 }
  0x55   : > { %s2067_s12 = scalar_lea.vmem %s2066_s11, 256  ;;  %p2068_p4 = scmp.lt.s32.totalorder %s2327_s30, %s2066_s11 }
  0x56   : > { %p2063_p2 = pnand %p2061_p12, %p2047_p0  ;;  %p2069_p13 = scmp.lt.s32.totalorder %s2067_s12, %s2060_s20 }
  0x58   : > { %p2064_p5 = pneg %p2063_p2  ;;  %p2070_p6 = por %p2069_p13, %p2068_p4 }
  0x5a   : > { %p2071_p10 = pnand %p2070_p6, %p2064_p5 }
  0x5c   : > { %2074 = shalt.err (!%p2071_p10)
}
  0x5d   : > { %1912 = dma.hbm_to_vmem [thread:$0]  (!%p2329_p11), %s2325_s27, 128, %s2327_s30, %s184_s6  }
  0x5e   : > { %203 = sbr.rel (%p2232_p8) target bundleno = 1714 (0x6b2), region = 36  ;;  %s2361_s29 = sand.u32 (!%p2232_p8), 1, %s2137_s16  }
  0x5f   : > { %s1759_s25 = sshll.u32 (!%p2232_p8), %s2361_s29, 3  ;;  %s206_s7 = scalar_lea.sflag (!%p2232_p8), [#allocation3], %s2361_s29 }
  0x60   : > { %s209_s8 = scalar_lea.vmem (!%p2232_p8), [#allocation2], %s1759_s25  ;;  %p2617_p4 = scmp.ne.s32.totalorder (!%p2232_p8), %s2610_s21, 0 }
  0x65   : > { %2120 = dma.done.wait (%p2617_p4), %s206_s7, 128  }
  0x66   : > { %2122 = vsyncadd (%p2617_p4), %s206_s7, 4294967168  ;;  %p2618_p5 = scmp.eq.s32.totalorder %s2213_s19, 0 }
  0x68   : > { %2124 = dma.done.wait (%p2618_p5), [#allocation6], 1024   ;;  %p2619_p8 = pmov %p2618_p5 }
  0x69   : > { %v2152_v0 = vmov 0.0|0.0   ;;  %vm2153_vm0 = vmmov 0   ;;  %v2154_v1 = vmov 0.0   ;;  %v243_v2 = vld [vmem:[#allocation5] sm:$0xff]  ;;  %v244_v3 = vld [vmem:[#allocation5 + $0x8] sm:$0xff]  ;;  %v245_v4 = vld [vmem:[#allocation5 + $0x10] sm:$0xff]  ;;  %v336_v16 = vlaneseq }
  0x6a   : > { %2126 = vsyncadd (%p2619_p8), [#allocation6], 4294966272  ;;  %1878 = vmatprep.subr.bf16.mxu0 %v2152_v0  ;;  %1824 = vmatprep.mubr.msk.f32.mxu0 %vm2153_vm0, %v2154_v1  ;;  %v1879_v5 = vpack.c.bf16 %v244_v3, %v243_v2  ;;  %v246_v6 = vld [vmem:[#allocation5 + $0x18] sm:$0xff]  ;;  %vm247_vm1 = vcmask 261120   ;;  %s2155_s21 = smov 104   ;;  %s2156_s23 = smov 120  }
  0x6b   : > { %1827 = vmatprep.subr.mxu1 %v2154_v1  ;;  %1829 = vmatprep.mubr.msk.f32.mxu1 %vm2153_vm0, %v2154_v1  ;;  %v1882_v7 = vpack.c.bf16 %v246_v6, %v245_v4  ;;  %v242_v8 = vld [vmem:[%s209_s8] sm:$0xff]  ;;  %s2157_s27 = smov 96   ;;  %s2158_s30 = smov 112   ;;  %v2159_v14 = vmov 1983009808   ;;  %v2402_v18 = vshrl.u32 %v336_v16, 7 }
  0x6c   : > { %1880 = vmatpush3.bf16.msra.mxu0 %v1879_v5  ;;  %v334_v15 = vunpack.c.l.s4 %v2159_v14  ;;  %v2160_v19 = vmov 1934713408   ;;  %vm769_vm2 = vcmask 64512   ;;  %s2162_s5 = smov 64   ;;  %s2163_s6 = smov 16   ;;  %vm1559_vm4 = vcmask 130048  }
  0x6d   : > { %1881 = vmatprep.subr.bf16.mxu0 %v2152_v0  ;;  %v366_v20 = vunpack.c.l.s4 %v2160_v19  ;;  %s2164_s26 = smov 8   ;;  %s2165_s10 = smov 24   ;;  %vm1561_vm5 = vcmask 195584  }
  0x6e   : > { %v335_v17 = vunpack.c.0.s8 %v334_v15  ;;  %s1787_s28 = sshll.u32 %s2213_s19, 7  ;;  %s241_s11 = scalar_lea.vmem [#allocation8], %s1759_s25 }
  0x6f   : > { %v367_v26 = vunpack.c.0.s8 %v366_v20  ;;  %s1662_s12 = sshll.u32 %s241_s11, 4  ;;  %p2620_p0 = scmp.ne.s32.totalorder %s2615_s13, 0  ;;  %s2559_s12 = int_to_ptr.vmem [resolvable:$true] %s1662_s12 }
  0x70   : > { %1883 = vmatpush3.bf16.msra.mxu0 %v1882_v7  ;;  %v2409_v23 = vsub.s32 %v335_v17, %v2402_v18  ;;  %s2075_s19 = scalar_lea.vmem %s2559_s12, 128  ;;  %s2166_s25 = smov [#allocation8]  }
  0x71   : > { %1847 = vmatprep.subr.mxu0 %v2154_v1  ;;  %v2420_v31 = vsub.s32 %v367_v26, %v2402_v18  ;;  %p2076_p11 = scmp.ne.s32.totalorder %s2559_s12, %s2075_s19 }
  0x73   : > { %1825 = vmatmul.mubr.msk.f32.vlgmr.msra.gmra.mrb[0].mxu0 %vm247_vm1, %v242_v8  ;;  %p2077_p1 = pnand %p2076_p11, %p2620_p0 }
  0x74   : > { %1849 = vmatprep.mubr.msk.f32.mxu0 %vm2153_vm0, %v2154_v1 }
  0x75   : > { %p2078_p3 = pneg %p2077_p1 }
 0x146   : > { %v2386_v9 = vpop.f32.mrb[0].mxu0 }
 0x147   : > { %328 = vrot.lane.b32.xlu1 %v2386_v9, %s2155_s21  ;;  %322 = vrot.lane.b32.xlu0 %v2386_v9, %s2156_s23  ;;  %v1826_v10 = vpop.f32.mrb[1].mxu0  ;;  %s2557_s21 = scalar_lea.hbm %s2606_s4, %s1787_s28  ;;  %s1649_s23 = scalar_lea.sflag [#allocation4], %s2361_s29 }
 0x14b   : > { %467 = vrot.lane.b32.xlu1 %v2386_v9, %s2157_s27  ;;  %325 = vrot.lane.b32.xlu0 %v2386_v9, %s2158_s30 }
 0x1b9   : > { %v2392_v11 = vpop.permute.xlu0 %322  ;;  %v2395_v12 = vpop.permute.xlu1 %328 }
 0x1ba   : > { %469 = vrot.lane.b32.xlu0 %v2392_v11, %s2157_s27  ;;  %v347_v24 = vcombine.low %v2392_v11, %v2395_v12  ;;  %v348_v25 = vcombine.high %v2392_v11, %v2395_v12 }
 0x1bc   : > { %v355_v29 = vrot.slane %v347_v24, %v2409_v23  ;;  %v362_v30 = vrot.slane %v348_v25, %v2409_v23 }
 0x1bd   : > { %v2397_v13 = vpop.permute.xlu0 %325  ;;  %v468_v32 = vpop.permute.xlu1 %467 }
 0x1be   : > { %473 = vrot.lane.b32.xlu0 %v2395_v12, %s2157_s27  ;;  %471 = vrot.lane.b32.xlu1 %v2397_v13, %s2157_s27  ;;  %v331_v21 = vcombine.low %v2386_v9, %v2397_v13  ;;  %v332_v22 = vcombine.high %v2386_v9, %v2397_v13  ;;  %s2079_s27 = sshll.u32 %s2166_s25, 4  ;;  %s2080_s27 = int_to_ptr.vmem [resolvable:$false] %s2079_s27 }
 0x1bf   : > { %s2081_s30 = scalar_lea.vmem %s2080_s27, 256  ;;  %p2082_p7 = scmp.lt.s32.totalorder %s2559_s12, %s2080_s27 }
 0x1c0   : > { %v339_v27 = vrot.slane %v331_v21, %v2409_v23  ;;  %v346_v28 = vrot.slane %v332_v22, %v2409_v23  ;;  %p2083_p9 = scmp.lt.s32.totalorder %s2081_s30, %s2075_s19 }
 0x1c2   : > { %v363_v33 = vcombine.low %v339_v27, %v355_v29  ;;  %v364_v34 = vcombine.high %v339_v27, %v355_v29  ;;  %v379_v35 = vcombine.low %v346_v28, %v362_v30  ;;  %v380_v36 = vcombine.high %v346_v28, %v362_v30  ;;  %p2084_p12 = por %p2083_p9, %p2082_p7 }
 0x1c4   : > { %v371_v38 = vrot.slane %v363_v33, %v2420_v31  ;;  %v378_v39 = vrot.slane %v364_v34, %v2420_v31  ;;  %v387_v40 = vrot.slane %v379_v35, %v2420_v31  ;;  %v394_v41 = vrot.slane %v380_v36, %v2420_v31  ;;  %p2085_p2 = pnand %p2084_p12, %p2078_p3 }
 0x1c6   : > { %v399_v52 = vcombine.low %v371_v38, %v378_v39  ;;  %v1764_v53 = vcombine.high %v371_v38, %v378_v39  ;;  %v415_v54 = vcombine.low %v387_v40, %v394_v41  ;;  %v1765_v55 = vcombine.high %v387_v40, %v394_v41 }
 0x1c8   : > { %v406_v2 = vrot.slane %v399_v52, %v2409_v23  ;;  %v414_v3 = vrot.slane %v1764_v53, %v2409_v23  ;;  %v422_v4 = vrot.slane %v415_v54, %v2409_v23  ;;  %v430_v5 = vrot.slane %v1765_v55, %v2409_v23 }
 0x1ca   : > { %v431_v20 = vcombine.low %v406_v2, %v414_v3  ;;  %v447_v21 = vcombine.low %v422_v4, %v430_v5  ;;  %v432_v33 = vcombine.high %v406_v2, %v414_v3  ;;  %v448_v34 = vcombine.high %v422_v4, %v430_v5 }
 0x1cc   : > { %v439_v27 = vrot.slane %v431_v20, %v2420_v31  ;;  %v455_v28 = vrot.slane %v447_v21, %v2420_v31  ;;  %v446_v40 = vrot.slane %v432_v33, %v2420_v31  ;;  %v462_v41 = vrot.slane %v448_v34, %v2420_v31 }
 0x1ce   : > { %v463_v35 = vcombine.low %v439_v27, %v455_v28  ;;  %v464_v39 = vcombine.high %v439_v27, %v455_v28 }
 0x22c   : > { %v470_v37 = vpop.permute.xlu0 %469 }
 0x230   : > { %v472_v42 = vpop.permute.xlu1 %471  ;;  %v474_v43 = vpop.permute.xlu0 %473 }
 0x231   : > { %v479_v44 = vcombine.low %v468_v32, %v472_v42  ;;  %v480_v45 = vcombine.high %v468_v32, %v472_v42  ;;  %v495_v46 = vcombine.low %v470_v37, %v474_v43  ;;  %v496_v47 = vcombine.high %v470_v37, %v474_v43 }
 0x232   : > { %v465_v43 = vcombine.low %v446_v40, %v462_v41 }
 0x233   : > { %v487_v48 = vrot.slane %v479_v44, %v2409_v23  ;;  %v494_v49 = vrot.slane %v480_v45, %v2409_v23  ;;  %v503_v50 = vrot.slane %v495_v46, %v2409_v23  ;;  %v510_v51 = vrot.slane %v496_v47, %v2409_v23 }
 0x234   : > { %v466_v45 = vcombine.high %v446_v40, %v462_v41  ;;  %v766_v46 = vand.u32 127, %v336_v16  ;;  %v2161_v47 = vmov -1e+30  }
 0x235   : > { %v511_v56 = vcombine.low %v487_v48, %v503_v50  ;;  %v512_v57 = vcombine.high %v487_v48, %v503_v50  ;;  %v527_v58 = vcombine.low %v494_v49, %v510_v51  ;;  %v528_v59 = vcombine.high %v494_v49, %v510_v51 }
 0x236   : > { %vm767_vm3 = vcmp.le.s32.totalorder %v766_v46, %v2402_v18 }
 0x237   : > { %v519_v60 = vrot.slane %v511_v56, %v2420_v31  ;;  %v526_v61 = vrot.slane %v512_v57, %v2420_v31  ;;  %v535_v62 = vrot.slane %v527_v58, %v2420_v31  ;;  %v542_v63 = vrot.slane %v528_v59, %v2420_v31 }
 0x238   : > { %v768_v48 = vsel %vm767_vm3, 0.0, %v2161_v47 }
 0x239   : > { %v547_v6 = vcombine.low %v519_v60, %v526_v61  ;;  %v1766_v7 = vcombine.high %v519_v60, %v526_v61  ;;  %v563_v8 = vcombine.low %v535_v62, %v542_v63  ;;  %v1767_v10 = vcombine.high %v535_v62, %v542_v63 }
 0x23b   : > { %v554_v14 = vrot.slane %v547_v6, %v2409_v23  ;;  %v562_v15 = vrot.slane %v1766_v7, %v2409_v23  ;;  %v570_v17 = vrot.slane %v563_v8, %v2409_v23  ;;  %v578_v19 = vrot.slane %v1767_v10, %v2409_v23 }
 0x23d   : > { %v579_v22 = vcombine.low %v554_v14, %v562_v15  ;;  %v595_v24 = vcombine.low %v570_v17, %v578_v19  ;;  %v580_v29 = vcombine.high %v554_v14, %v562_v15  ;;  %v596_v30 = vcombine.high %v570_v17, %v578_v19 }
 0x23f   : > { %v587_v25 = vrot.slane %v579_v22, %v2420_v31  ;;  %v603_v26 = vrot.slane %v595_v24, %v2420_v31  ;;  %v594_v37 = vrot.slane %v580_v29, %v2420_v31  ;;  %v610_v38 = vrot.slane %v596_v30, %v2420_v31 }
 0x241   : > { %v611_v32 = vcombine.low %v587_v25, %v603_v26  ;;  %v612_v36 = vcombine.high %v587_v25, %v603_v26  ;;  %v613_v42 = vcombine.low %v594_v37, %v610_v38  ;;  %v614_v44 = vcombine.high %v594_v37, %v610_v38 }
 0x243   : > { %1828 = vmatpush3.xpose.msk.msra.mxu1 %vm769_vm2, %v611_v32 }
 0x244   : > { %1832 = vmatprep.subr.mxu1 %v2154_v1 }
 0x246   : > { %1830 = vmatmul.mubr.msk.f32.vlgmr.msra.gmra.mrb[0].mxu1 %vm769_vm2, %v463_v35 }
 0x247   : > { %1833 = vmatpush3.xpose.msk.msra.mxu1 %vm769_vm2, %v612_v36  ;;  %1834 = vmatprep.mubr.msk.f32.mxu1 %vm2153_vm0, %v2154_v1 }
 0x248   : > { %1837 = vmatprep.subr.mxu1 %v2154_v1 }
 0x24a   : > { %1835 = vmatmul.mubr.msk.f32.vlgmr.msra.gmra.mrb[2].mxu1 %vm769_vm2, %v464_v39 }
 0x24b   : > { %1838 = vmatpush3.xpose.msk.msra.mxu1 %vm769_vm2, %v613_v42  ;;  %1839 = vmatprep.mubr.msk.f32.mxu1 %vm2153_vm0, %v2154_v1 }
 0x24c   : > { %1842 = vmatprep.subr.mxu1 %v2154_v1 }
 0x24e   : > { %1840 = vmatmul.mubr.msk.f32.vlgmr.msra.gmra.mrb[4].mxu1 %vm769_vm2, %v465_v43 }
 0x24f   : > { %1843 = vmatpush3.xpose.msk.msra.mxu1 %vm769_vm2, %v614_v44  ;;  %1844 = vmatprep.mubr.msk.f32.mxu1 %vm2153_vm0, %v2154_v1 }
 0x250   : > { %1852 = vmatprep.subr.mxu1 %v2154_v1 }
 0x252   : > { %1845 = vmatmul.mubr.msk.f32.vlgmr.msra.gmra.mrb[6].mxu1 %vm769_vm2, %v466_v45 }
 0x253   : > { %1854 = vmatprep.mubr.msk.f32.mxu1 %vm2153_vm0, %v2154_v1 }
 0x319   : > { %v842_v49 = vpop.f32.mrb[0].mxu1 }
 0x31a   : > { %v843_v50 = vadd.f32 %v842_v49, %v768_v48  ;;  %v1831_v51 = vpop.f32.mrb[1].mxu1 }
 0x31c   : > { %v1074_v52 = vsel %vm769_vm2, %v843_v50, -inf }
 0x31d   : > { %1075 = vmax.xlane.f32.xlu1 %v1074_v52  ;;  %v918_v53 = vpop.f32.mrb[2].mxu1 }
 0x31e   : > { %v919_v54 = vadd.f32 %v918_v53, %v768_v48  ;;  %v1836_v55 = vpop.f32.mrb[3].mxu1 }
 0x320   : > { %v1077_v56 = vsel %vm769_vm2, %v919_v54, -inf }
 0x321   : > { %1078 = vmax.xlane.f32.xlu0 %v1077_v56  ;;  %v994_v57 = vpop.f32.mrb[4].mxu1 }
 0x322   : > { %v995_v58 = vadd.f32 %v994_v57, %v768_v48  ;;  %v1841_v59 = vpop.f32.mrb[5].mxu1 }
 0x324   : > { %v1080_v16 = vsel %vm769_vm2, %v995_v58, -inf }
 0x325   : > { %1081 = vmax.xlane.f32.xlu0 %v1080_v16  ;;  %v1070_v18 = vpop.f32.mrb[6].mxu1 }
 0x326   : > { %v1071_v60 = vadd.f32 %v1070_v18, %v768_v48  ;;  %v1846_v61 = vpop.f32.mrb[7].mxu1 }
 0x328   : > { %v1083_v62 = vsel %vm769_vm2, %v1071_v60, -inf }
 0x329   : > { %1084 = vmax.xlane.f32.xlu1 %v1083_v62 }
 0x33a   : > { %617 = vrot.lane.b32.xlu1 %v2392_v11, %s2162_s5 }
 0x33b   : > { %615 = vrot.lane.b32.xlu0 %v2386_v9, %s2162_s5 }
 0x3aa   : > { %v1076_v63 = vpop.xlane.xlu1 %1075 }
 0x3ab   : > { %v1086_v2 = vsub.f32 %v843_v50, %v1076_v63 }
 0x3ad   : > { %v1090_v3 = vmul.f32 1.442695, %v1086_v2 }
 0x3ae   : > { %v1079_v4 = vpop.xlane.xlu0 %1078 }
 0x3af   : > { %1973 = vpow2.f32 %v1090_v3  ;;  %v1087_v5 = vsub.f32 %v919_v54, %v1079_v4 }
 0x3b1   : > { %v1092_v6 = vmul.f32 1.442695, %v1087_v5 }
 0x3b2   : > { %v1082_v7 = vpop.xlane.xlu0 %1081 }
 0x3b3   : > { %1975 = vpow2.f32 %v1092_v6  ;;  %v1088_v8 = vsub.f32 %v995_v58, %v1082_v7 }
 0x3b5   : > { %v1094_v10 = vmul.f32 1.442695, %v1088_v8 }
 0x3b6   : > { %v1085_v14 = vpop.xlane.xlu1 %1084  ;;  %v616_v26 = vpop.permute.xlu0 %615 }
 0x3b7   : > { %1977 = vpow2.f32 %v1094_v10  ;;  %v1089_v15 = vsub.f32 %v1071_v60, %v1085_v14 }
 0x3b9   : > { %v2480_v17 = vpop.eup %1973  ;;  %v1096_v11 = vmul.f32 1.442695, %v1089_v15 }
 0x3ba   : > { %v1098_v9 = vsel %vm769_vm2, %v2480_v17, 0.0  ;;  %v618_v27 = vpop.permute.xlu1 %617 }
 0x3bb   : > { %1979 = vpow2.f32 %v1096_v11  ;;  %1099 = vadd.xlane.f32.xlu0 %v1098_v9  ;;  %v1564_v9 = vld [vmem:[#allocation7 + $0x8] sm:$0xff] }
 0x3bd   : > { %v1976_v19 = vpop.eup %1975 }
 0x3be   : > { %v1101_v20 = vsel %vm769_vm2, %v1976_v19, 0.0 }
 0x3bf   : > { %1102 = vadd.xlane.f32.xlu1 %v1101_v20 }
 0x3c1   : > { %v2485_v21 = vpop.eup %1977 }
 0x3c2   : > { %v1104_v22 = vsel %vm769_vm2, %v2485_v21, 0.0 }
 0x3c3   : > { %1105 = vadd.xlane.f32.xlu0 %v1104_v22 }
 0x3c5   : > { %v2489_v24 = vpop.eup %1979 }
 0x3c6   : > { %v1107_v25 = vsel %vm769_vm2, %v2489_v24, 0.0 }
 0x3c7   : > { %1108 = vadd.xlane.f32.xlu1 %v1107_v25 }
 0x3d8   : > { %619 = vrot.lane.b32.xlu1 %v2397_v13, %s2162_s5 }
 0x3d9   : > { %621 = vrot.lane.b32.xlu0 %v2395_v12, %s2162_s5 }
 0x448   : > { %v1100_v28 = vpop.xlane.xlu0 %1099 }
 0x449   : > { %1981 = vrcp.f32 %v1100_v28 }
 0x44c   : > { %v1103_v29 = vpop.xlane.xlu1 %1102 }
 0x44d   : > { %1983 = vrcp.f32 %v1103_v29 }
 0x450   : > { %v1106_v30 = vpop.xlane.xlu0 %1105 }
 0x451   : > { %1985 = vrcp.f32 %v1106_v30 }
 0x453   : > { %v1982_v57 = vpop.eup %1981 }
 0x454   : > { %v622_v32 = vpop.permute.xlu0 %621  ;;  %v1109_v33 = vpop.xlane.xlu1 %1108  ;;  %v1114_v7 = vmul.f32 %v1982_v57, %v2480_v17  ;;  %v1563_v17 = vld [vmem:[#allocation7] sm:$0xff] }
 0x455   : > { %v643_v34 = vcombine.low %v618_v27, %v622_v32  ;;  %v644_v35 = vcombine.high %v618_v27, %v622_v32  ;;  %1987 = vrcp.f32 %v1109_v33 }
 0x457   : > { %v651_v39 = vrot.slane %v643_v34, %v2409_v23  ;;  %v658_v13 = vrot.slane %v644_v35, %v2409_v23  ;;  %v1984_v60 = vpop.eup %1983 }
 0x458   : > { %v620_v36 = vpop.permute.xlu1 %619  ;;  %v1115_v8 = vmul.f32 %v1984_v60, %v1976_v19  ;;  %v1885_v19 = vpack.c.bf16 %v1564_v9, %v1563_v17 }
 0x459   : > { %v627_v37 = vcombine.low %v616_v26, %v620_v36  ;;  %v628_v38 = vcombine.high %v616_v26, %v620_v36 }
 0x45b   : > { %v635_v40 = vrot.slane %v627_v37, %v2409_v23  ;;  %v642_v12 = vrot.slane %v628_v38, %v2409_v23  ;;  %v1986_v63 = vpop.eup %1985 }
 0x45c   : > { %v1116_v15 = vmul.f32 %v1986_v63, %v2485_v21 }
 0x45d   : > { %v659_v41 = vcombine.low %v635_v40, %v651_v39  ;;  %v660_v42 = vcombine.high %v635_v40, %v651_v39  ;;  %v675_v43 = vcombine.low %v642_v12, %v658_v13  ;;  %v676_v44 = vcombine.high %v642_v12, %v658_v13  ;;  %v1565_v13 = vld [vmem:[#allocation7 + $0x10] sm:$0xff]  ;;  %v1566_v40 = vld [vmem:[#allocation7 + $0x18] sm:$0xff] }
 0x45f   : > { %v667_v45 = vrot.slane %v659_v41, %v2420_v31  ;;  %v674_v46 = vrot.slane %v660_v42, %v2420_v31  ;;  %v683_v47 = vrot.slane %v675_v43, %v2420_v31  ;;  %v690_v48 = vrot.slane %v676_v44, %v2420_v31  ;;  %v1988_v6 = vpop.eup %1987 }
 0x460   : > { %v1117_v11 = vmul.f32 %v1988_v6, %v2489_v24  ;;  %v1888_v44 = vpack.c.bf16 %v1566_v40, %v1565_v13 }
 0x461   : > { %v695_v49 = vcombine.low %v667_v45, %v674_v46  ;;  %v1768_v50 = vcombine.high %v667_v45, %v674_v46  ;;  %v711_v51 = vcombine.low %v683_v47, %v690_v48  ;;  %v1769_v52 = vcombine.high %v683_v47, %v690_v48 }
 0x463   : > { %v702_v53 = vrot.slane %v695_v49, %v2409_v23  ;;  %v710_v54 = vrot.slane %v1768_v50, %v2409_v23  ;;  %v718_v55 = vrot.slane %v711_v51, %v2409_v23  ;;  %v726_v56 = vrot.slane %v1769_v52, %v2409_v23 }
 0x465   : > { %v727_v58 = vcombine.low %v702_v53, %v710_v54  ;;  %v743_v59 = vcombine.low %v718_v55, %v726_v56  ;;  %v728_v16 = vcombine.high %v702_v53, %v710_v54  ;;  %v744_v18 = vcombine.high %v718_v55, %v726_v56 }
 0x467   : > { %v735_v61 = vrot.slane %v727_v58, %v2420_v31  ;;  %v751_v62 = vrot.slane %v743_v59, %v2420_v31  ;;  %v742_v2 = vrot.slane %v728_v16, %v2420_v31  ;;  %v758_v3 = vrot.slane %v744_v18, %v2420_v31 }
 0x469   : > { %v759_v4 = vcombine.low %v735_v61, %v751_v62  ;;  %v760_v5 = vcombine.high %v735_v61, %v751_v62  ;;  %v761_v10 = vcombine.low %v742_v2, %v758_v3  ;;  %v762_v14 = vcombine.high %v742_v2, %v758_v3 }
 0x46b   : > { %1848 = vmatpush3.msra.mxu0 %v759_v4  ;;  %1853 = vmatpush3.msra.mxu1 %v760_v5  ;;  %v1784_v5 = vld [vmem:[%s2605_s3] ss:$0 sm:$0xff] }
 0x46c   : > { %1850 = vmatmul.mubr.msk.f32.vlgmr.msra.gmra.mrb[2].mxu0 %vm769_vm2, %v1114_v7  ;;  %1855 = vmatmul.mubr.msk.f32.vlgmr.msra.gmra.mrb[8].mxu1 %vm769_vm2, %v1115_v8 }
 0x46d   : > { %1857 = vmatprep.subr.mxu0 %v2154_v1  ;;  %1862 = vmatprep.subr.mxu1 %v2154_v1 }
 0x46e   : > { %1858 = vmatpush3.msra.mxu0 %v761_v10  ;;  %1863 = vmatpush3.msra.mxu1 %v762_v14 }
 0x46f   : > { %1859 = vmatprep.mubr.msk.f32.mxu0 %vm2153_vm0, %v2154_v1  ;;  %1864 = vmatprep.mubr.msk.f32.mxu1 %vm2153_vm0, %v2154_v1 }
 0x470   : > { %1860 = vmatmul.mubr.msk.f32.vlgmr.msra.gmra.mrb[4].mxu0 %vm769_vm2, %v1116_v15  ;;  %1865 = vmatmul.mubr.msk.f32.vlgmr.msra.gmra.mrb[10].mxu1 %vm769_vm2, %v1117_v11 }
 0x471   : > { %1884 = vmatprep.subr.bf16.mxu0 %v2152_v0  ;;  %1875 = vmatprep.mubr.msk.f32.mxu0 %vm2153_vm0, %v2154_v1 }
 0x472   : > { %1886 = vmatpush3.bf16.msra.mxu0 %v1885_v19 }
 0x473   : > { %1887 = vmatprep.subr.bf16.mxu0 %v2152_v0 }
 0x476   : > { %1889 = vmatpush3.bf16.msra.mxu0 %v1888_v44 }
 0x53f   : > { %v1187_v20 = vpop.f32.mrb[2].mxu0  ;;  %v1260_v21 = vpop.f32.mrb[8].mxu1 }
 0x540   : > { %v1851_v22 = vpop.f32.mrb[3].mxu0  ;;  %v1856_v24 = vpop.f32.mrb[9].mxu1 }
 0x543   : > { %v1333_v25 = vpop.f32.mrb[4].mxu0  ;;  %v1406_v26 = vpop.f32.mrb[10].mxu1 }
 0x544   : > { %v1410_v27 = vcombine.low %v1187_v20, %v1333_v25  ;;  %v1411_v28 = vcombine.high %v1187_v20, %v1333_v25  ;;  %v1426_v29 = vcombine.low %v1260_v21, %v1406_v26  ;;  %v1427_v30 = vcombine.high %v1260_v21, %v1406_v26  ;;  %v1861_v32 = vpop.f32.mrb[5].mxu0  ;;  %v1866_v33 = vpop.f32.mrb[11].mxu1 }
 0x546   : > { %v1418_v1 = vrot.slane %v1410_v27, %v2409_v23  ;;  %v1425_v34 = vrot.slane %v1411_v28, %v2409_v23  ;;  %v1434_v35 = vrot.slane %v1426_v29, %v2409_v23  ;;  %v1441_v0 = vrot.slane %v1427_v30, %v2409_v23 }
 0x548   : > { %v1442_v36 = vcombine.low %v1418_v1, %v1434_v35  ;;  %v1443_v37 = vcombine.high %v1418_v1, %v1434_v35  ;;  %v1458_v38 = vcombine.low %v1425_v34, %v1441_v0  ;;  %v1459_v39 = vcombine.high %v1425_v34, %v1441_v0 }
 0x54a   : > { %v1450_v12 = vrot.slane %v1442_v36, %v2420_v31  ;;  %v1457_v41 = vrot.slane %v1443_v37, %v2420_v31  ;;  %v1466_v42 = vrot.slane %v1458_v38, %v2420_v31  ;;  %v1473_v43 = vrot.slane %v1459_v39, %v2420_v31 }
 0x54c   : > { %v1478_v45 = vcombine.low %v1450_v12, %v1457_v41  ;;  %v1782_v46 = vcombine.high %v1450_v12, %v1457_v41  ;;  %v1494_v47 = vcombine.low %v1466_v42, %v1473_v43  ;;  %v1783_v48 = vcombine.high %v1466_v42, %v1473_v43 }
 0x54e   : > { %v1485_v49 = vrot.slane %v1478_v45, %v2409_v23  ;;  %v1493_v50 = vrot.slane %v1782_v46, %v2409_v23  ;;  %v1501_v51 = vrot.slane %v1494_v47, %v2409_v23  ;;  %v1509_v52 = vrot.slane %v1783_v48, %v2409_v23 }
 0x550   : > { %v1511_v53 = vcombine.high %v1485_v49, %v1493_v50  ;;  %v1527_v54 = vcombine.high %v1501_v51, %v1509_v52  ;;  %v1510_v55 = vcombine.low %v1485_v49, %v1493_v50  ;;  %v1526_v56 = vcombine.low %v1501_v51, %v1509_v52 }
 0x552   : > { %v1525_v57 = vrot.slane %v1511_v53, %v2420_v31  ;;  %v1541_v58 = vrot.slane %v1527_v54, %v2420_v31  ;;  %v1518_v59 = vrot.slane %v1510_v55, %v2420_v31  ;;  %v1534_v16 = vrot.slane %v1526_v56, %v2420_v31 }
 0x554   : > { %v1544_v18 = vcombine.low %v1525_v57, %v1541_v58  ;;  %v1543_v60 = vcombine.high %v1518_v59, %v1534_v16  ;;  %v1545_v61 = vcombine.high %v1525_v57, %v1541_v58  ;;  %v1542_v62 = vcombine.low %v1518_v59, %v1534_v16 }
 0x556   : > { %1551 = vrot.lane.b32.xlu0 %v1544_v18, %s2163_s6  ;;  %1547 = vrot.lane.b32.xlu1 %v1543_v60, %s2164_s26 }
 0x55a   : > { %1555 = vrot.lane.b32.xlu1 %v1545_v61, %s2165_s10 }
 0x5c8   : > { %v1548_v23 = vpop.permute.xlu1 %1547  ;;  %v1552_v63 = vpop.permute.xlu0 %1551 }
 0x5c9   : > { %v1558_v2 = vsel %vm769_vm2, %v1542_v62, %v1548_v23 }
 0x5ca   : > { %v1560_v3 = vsel %vm1559_vm4, %v1558_v2, %v1552_v63 }
 0x5cc   : > { %v1556_v31 = vpop.permute.xlu1 %1555 }
 0x5cd   : > { %v1562_v4 = vsel %vm1561_vm5, %v1560_v3, %v1556_v31 }
 0x5ce   : > { %1876 = vmatmul.mubr.msk.f32.vlgmr.msra.gmra.mrb[6].mxu0 %vm247_vm1, %v1562_v4 }
 0x6a1   : > { %v1643_v6 = vpop.f32.mrb[6].mxu0 }
 0x6a2   : > { %v1644_v7 = vadd.f32 %v1784_v5, %v1643_v6  ;;  %v1877_v8 = vpop.f32.mrb[7].mxu0 }
 0x6a4   : > { %1647 = vst.msk [vmem:[%s241_s11] sm:$0xff] %vm247_vm1, %v1644_v7 }
 0x6a5   : > { %2088 = shalt.err (!%p2085_p2)
}
 0x6a6   : > { %s2089_s29 = scalar_lea.hbm %s2557_s21, 128  ;;  %s2093_s26 = scalar_lea.hbm %s2606_s4, 256 }
 0x6a7   : > { %p2090_p13 = scmp.ne.s32.totalorder %s2557_s21, %s2089_s29  ;;  %p2094_p4 = scmp.lt.u32.totalorder %s2557_s21, %s2606_s4 }
 0x6a8   : > { %p2095_p5 = scmp.lt.u32.totalorder %s2093_s26, %s2089_s29  ;;  %p2097_p11 = scmp.lt.u32.totalorder %s2089_s29, %s2557_s21 }
 0x6a9   : > { %p2091_p6 = pnand %p2090_p13, %p2620_p0 }
 0x6aa   : > { %p2096_p8 = por %p2095_p5, %p2094_p4 }
 0x6ab   : > { %p2092_p10 = pneg %p2091_p6 }
 0x6ac   : > { %p2098_p1 = por %p2097_p11, %p2096_p8 }
 0x6ae   : > { %p2099_p3 = pnand %p2098_p1, %p2092_p10 }
 0x6b0   : > { %2102 = shalt.err (!%p2099_p3)
}
 0x6b1   : > { %1900 = dma.vmem_to_hbm [thread:$0]  (%p2620_p0), %s2559_s12, 128, %s2557_s21, %s1649_s23  }
 0x6b2 PF: > { %s1674_s20 = sand.u32 1, %s2133_s15   ;;  %p2621_p7 = scmp.ne.s32.totalorder %s2611_s22, 0 }
 0x6b3   : > { %p2622_p9 = scmp.ge.s32.totalorder %s2145_s18, 2  ;;  %s1675_s28 = scalar_lea.sflag [#allocation4], %s1674_s20 }
 0x6b5   : > { %p1914_p12 = pnand %p2622_p9, %p2621_p7 }
 0x6b7   : > { %2128 = dma.done.wait (!%p1914_p12), %s1675_s28, 128  }
 0x6b8   : > { %2130 = vsyncadd (!%p1914_p12), %s1675_s28, 4294967168  ;;  %p18_p2 = scmp.ge.s32.totalorder %s2302_s9, 4   ;;  %s2623_s15 = smov %s2137_s16 }
 0x6b9   : > { %s2624_s16 = smov %s2141_s17  ;;  %s2625_s17 = smov %s2318_s14 }
 0x6ba   : > { %s2626_s18 = smov %s2302_s9  ;;  %20 = sbr.rel (!%p18_p2) target bundleno = 6 (0x6), region = 89 }
 0x6c1   :  { %1680 = vsyncpa [#allocation3], 1 }
 0x6c2   :  { %1682 = vsyncpa [#allocation3 + $0x1], 1 }
 0x6c3   :  { %1683 = vsyncpa [#allocation6], 1 }
 0x6c4   :  { %1684 = vsyncpa [#allocation4], 1 }
 0x6c5   :  { %1686 = vsyncpa [#allocation4 + $0x1], 1 }

</bundles_post_ra>
